<compile_context>
chip_gen: v6e
topology: v6e:2x2x1
jax: 0.10.0
libtpu: 0.0.40
codegen_flags: <defaults>
</compile_context>

<pallas_src>
import jax
import jax.numpy as jnp
from jax.experimental import pallas as pl
from jax.experimental.pallas import tpu as pltpu


def _round_up(x, m):
    return ((x + m - 1) // m) * m


def _cdiv(a, b):
    return (a + b - 1) // b


def _sublane(dtype):
    # minimum second-to-last-dim granularity: f32 -> 8, bf16 -> 16, 8-bit -> 32
    return max(8, 32 // jnp.dtype(dtype).itemsize)


# ---------------------------------------------------------------------------
# Kernel
# ---------------------------------------------------------------------------
def linear_kernel(x_ref, w_ref, b_ref, o_ref):
    # x_ref: (tm, K)   activation tile
    # w_ref: (K, tn)   weight tile, pre-transposed -> lane-dense, NN matmul
    # b_ref: (1, tn)   bias tile (f32)
    # o_ref: (tm, tn)
    acc = jnp.dot(x_ref[...], w_ref[...], preferred_element_type=jnp.float32)
    o_ref[...] = (acc + b_ref[...]).astype(o_ref.dtype)


# ---------------------------------------------------------------------------
# Tile selection / VMEM budgeting
# ---------------------------------------------------------------------------
_VMEM_TILE_BUDGET = 36 << 20   # conservative: fits v7x's 64 MiB physical VMEM
_VMEM_LIMIT_BYTES = 48 << 20   # > v5e's 16 MiB scoped default, < v7x physical


def _vmem_estimate(tm, tn, K, x_dt, w_dt, b_dt, o_dt):
    # Pallas double-buffers every BlockSpec operand by default; account for it.
    xb = 2 * tm * _round_up(K, 128) * jnp.dtype(x_dt).itemsize
    wb = 2 * _round_up(K, _sublane(w_dt)) * tn * jnp.dtype(w_dt).itemsize
    bb = 2 * 8 * tn * jnp.dtype(b_dt).itemsize
    ob = 2 * tm * tn * jnp.dtype(o_dt).itemsize
    return xb + wb + bb + ob


def _choose_tiles(B, N, K, x_dt, w_dt, o_dt):
    sub = max(_sublane(x_dt), _sublane(o_dt))
    Bsub = _round_up(B, sub)
    N128 = _round_up(N, 128)

    # Large batch tile amortizes per-grid-step overhead; whole output dim
    # resident (grid_n=1) means the weight is DMA'd exactly once.
    tm = min(Bsub, _round_up(512, sub))
    tn = N128

    def fits(tm_, tn_):
        return _vmem_estimate(tm_, tn_, K, x_dt, w_dt, jnp.float32,
                              o_dt) <= _VMEM_TILE_BUDGET

    while not fits(tm, tn) and tn > 128:
        tn = _round_up(_cdiv(tn, 2), 128)
    while not fits(tm, tn) and tm > sub:
        tm = _round_up(_cdiv(tm, 2), sub)

    # Re-balance tiles so padding waste is bounded (avoid rounding B/N up to a
    # tile that is mostly padding).
    grid_n = _cdiv(N128, tn)
    tn = _round_up(_cdiv(N128, grid_n), 128)
    grid_m = _cdiv(Bsub, tm)
    tm = _round_up(_cdiv(Bsub, grid_m), sub)

    # v7x has 2 TensorCores: give a 1x1 grid two 'parallel' programs when it
    # costs no extra padding (harmless one extra grid step on v5e/v6e).
    if grid_n == 1 and grid_m == 1:
        if N128 % 256 == 0:
            tn, grid_n = N128 // 2, 2
        elif Bsub % (2 * sub) == 0:
            tm, grid_m = Bsub // 2, 2

    return tm, tn, grid_m, grid_n


# ---------------------------------------------------------------------------
# Wrapper
# ---------------------------------------------------------------------------
def vae_decoder_forward(x, weight, bias, *, compute_dtype=None, out_dtype=None):
    """Equivalent of VAE_Decoder.forward: x @ weight.T + bias.

    x       : [B, latent_dim]
    weight  : [output_dim, latent_dim]  (PyTorch nn.Linear layout, NOT transposed)
    bias    : [output_dim]
    returns : [B, output_dim] in x.dtype (or out_dtype if given)
    """
    B, K = x.shape
    N, K2 = weight.shape
    assert K == K2, "latent_dim mismatch"
    if out_dtype is None:
        out_dtype = x.dtype

    # Optional low-precision matmul inputs (bf16 MXU exists on v5e/v6e/v7x);
    # accumulation and bias-add stay f32.
    if compute_dtype is not None:
        x = x.astype(compute_dtype)
        weight = weight.astype(compute_dtype)

    # One-time layout change outside the kernel: [N, K] -> [K, N].
    w_t = weight.T
    bias_f32 = bias.astype(jnp.float32)

    tm, tn, grid_m, grid_n = _choose_tiles(B, N, K, x.dtype, w_t.dtype, out_dtype)
    Bp = grid_m * tm
    Np = grid_n * tn

    xp = x if Bp == B else jnp.pad(x, ((0, Bp - B), (0, 0)))
    wp = w_t if Np == N else jnp.pad(w_t, ((0, 0), (0, Np - N)))
    bp = (bias_f32 if Np == N else jnp.pad(bias_f32, (0, Np - N))).reshape(1, Np)

    cost = pl.CostEstimate(
        flops=2 * Bp * K * Np,
        transcendentals=0,
        bytes_accessed=int(grid_n * xp.size * xp.dtype.itemsize   # x re-read per N tile
                           + wp.size * wp.dtype.itemsize          # W streamed once
                           + bp.size * bp.dtype.itemsize
                           + Bp * Np * jnp.dtype(out_dtype).itemsize))

    # Grid order: N tiles on the slow (outer) axis, batch tiles innermost, so
    # the weight/bias block index is constant across the whole inner batch
    # loop -> Pallas skips their HBM DMA there (weight read from HBM once).
    out = pl.pallas_call(
        linear_kernel,
        out_shape=jax.ShapeDtypeStruct((Bp, Np), out_dtype),
        grid_spec=pltpu.PrefetchScalarGridSpec(
            num_scalar_prefetch=0,
            grid=(grid_n, grid_m),
            in_specs=[
                pl.BlockSpec((tm, K), lambda n, m: (m, 0)),   # x tile
                pl.BlockSpec((K, tn), lambda n, m: (0, n)),   # W^T tile (resident over m)
                pl.BlockSpec((1, tn), lambda n, m: (0, n)),   # bias tile (resident over m)
            ],
            out_specs=pl.BlockSpec((tm, tn), lambda n, m: (m, n)),
        ),
        compiler_params=pltpu.CompilerParams(
            dimension_semantics=("parallel", "parallel"),
            vmem_limit_bytes=_VMEM_LIMIT_BYTES,
        ),
        cost_estimate=cost,
    )(xp, wp, bp)

    return out[:B, :N]


def init_vae_decoder_params(key, latent_dim, output_dim):
    """Init mirroring the module: torch trunc_normal_(0, 0.01, a=-2, b=2) truncates
    at +-200 sigma (effectively untruncated), so plain normal*0.01; bias zero."""
    w = 0.01 * jax.random.normal(key, (output_dim, latent_dim), dtype=jnp.float32)
    b = jnp.zeros((output_dim,), dtype=jnp.float32)
    return w, b


if __name__ == "__main__":
    latent_dim = 32
    output_dim = 64
    batch = 8

    key = jax.random.PRNGKey(0)
    kx, kw = jax.random.split(key)

    x = jax.random.normal(kx, (batch, latent_dim), dtype=jnp.float32)
    weight, bias = init_vae_decoder_params(kw, latent_dim, output_dim)

    # f32 path (exact module semantics)
    y = vae_decoder_forward(x, weight, bias)
    y = jax.block_until_ready(y)
    y_ref = x @ weight.T + bias
    assert y.shape == (batch, output_dim)
    assert jnp.allclose(y, y_ref, atol=1e-5, rtol=1e-5)

    # bf16-input path (bandwidth optimization on v5e/v6e/v7x; f32 accumulate)
    y_bf16 = vae_decoder_forward(x, weight, bias, compute_dtype=jnp.bfloat16)
    y_bf16 = jax.block_until_ready(y_bf16)
    assert y_bf16.shape == (batch, output_dim)
    assert jnp.allclose(y_bf16, y_ref, atol=5e-3, rtol=2e-2)

    print("KERNEL_OK")
</pallas_src>

<mosaic_0001>
module attributes {stable_mosaic.version = 11 : i64} {
  func.func @linear_kernel(%arg0: i32, %arg1: i32, %arg2: memref<8x32xf32, #tpu.memory_space<vmem>>, %arg3: memref<32x128xf32, #tpu.memory_space<vmem>>, %arg4: memref<1x128xf32, #tpu.memory_space<vmem>>, %arg5: memref<8x128xf32, #tpu.memory_space<vmem>>) attributes {dimension_semantics = [#tpu.dimension_semantics<parallel>, #tpu.dimension_semantics<parallel>], iteration_bounds = array<i64: 1, 1>, scalar_prefetch = 0 : i64, scratch_operands = 0 : i64, tpu.core_type = #tpu.core_type<tc>, window_params = [{transform_indices = @transform_0, window_bounds = array<i64: 8, 32>}, {transform_indices = @transform_1, window_bounds = array<i64: 32, 128>}, {transform_indices = @transform_2, window_bounds = array<i64: 1, 128>}, {transform_indices = @transform_3, window_bounds = array<i64: 8, 128>}]} {
    %c0 = arith.constant 0 : index
    %c0_0 = arith.constant 0 : index
    %0 = vector.load %arg2[%c0, %c0_0] : memref<8x32xf32, #tpu.memory_space<vmem>>, vector<8x32xf32>
    %c0_1 = arith.constant 0 : index
    %c0_2 = arith.constant 0 : index
    %1 = vector.load %arg3[%c0_1, %c0_2] : memref<32x128xf32, #tpu.memory_space<vmem>>, vector<32x128xf32>
    %cst = arith.constant dense<0.000000e+00> : vector<8x128xf32>
    %2 = tpu.matmul %0, %1, %cst {dimension_numbers = #tpu.dot_dimension_numbers<[1], [0], [0], [1], [0, 0, 1, 1], [], []>} : vector<8x32xf32>, vector<32x128xf32>, vector<8x128xf32> -> vector<8x128xf32>
    %c0_3 = arith.constant 0 : index
    %c0_4 = arith.constant 0 : index
    %3 = vector.load %arg4[%c0_3, %c0_4] : memref<1x128xf32, #tpu.memory_space<vmem>>, vector<1x128xf32>
    %4 = vector.broadcast %3 : vector<1x128xf32> to vector<8x128xf32>
    %5 = arith.addf %2, %4 : vector<8x128xf32>
    %c0_5 = arith.constant 0 : index
    %c0_6 = arith.constant 0 : index
    %6 = vector.load %arg5[%c0_5, %c0_6] : memref<8x128xf32, #tpu.memory_space<vmem>>, vector<8x128xf32>
    tpu.vector_store %arg5[%c0_5, %c0_6], %5 {strides = array<i32>} : memref<8x128xf32, #tpu.memory_space<vmem>>, vector<8x128xf32>,
    return
  }
  func.func @transform_0(%arg0: i32, %arg1: i32) -> (i32, i32) {
    %c0_i32 = arith.constant 0 : i32
    %c0_i32_0 = arith.constant 0 : i32
    return %arg1, %c0_i32 : i32, i32
  }
  func.func @transform_1(%arg0: i32, %arg1: i32) -> (i32, i32) {
    %c0_i32 = arith.constant 0 : i32
    %c0_i32_0 = arith.constant 0 : i32
    return %c0_i32, %arg0 : i32, i32
  }
  func.func @transform_2(%arg0: i32, %arg1: i32) -> (i32, i32) {
    %c0_i32 = arith.constant 0 : i32
    %c0_i32_0 = arith.constant 0 : i32
    return %c0_i32, %arg0 : i32, i32
  }
  func.func @transform_3(%arg0: i32, %arg1: i32) -> (i32, i32) {
    %c0_i32 = arith.constant 0 : i32
    return %arg1, %arg0 : i32, i32
  }
}

</mosaic_0001>

<bundles_post_ra>
// kernel: tpu_custom_call.1
= control target key start
LH: loop header
LB: loop body
LE: loop exit
PB: predicated region body
PF: predicated region fallthrough
CT: control target
= control target key end

     0   :  { %8 = vsyncpa [#allocation3], 0  ;;  %s274_s0 = inlined_call_operand.hbm [shape: f32[8,32], index: 0, kind: input, shape index: {}]   ;;  %s275_s1 = inlined_call_operand.hbm [shape: f32[32,128], index: 1, kind: input, shape index: {}]   ;;  %s276_s2 = inlined_call_operand.vmem [shape: f32[1,128], index: 2, kind: input, shape index: {}]   ;;  %s277_s3 = inlined_call_operand.hbm [shape: f32[8,128], index: 3, kind: output, shape index: {}]  }
   0x1   :  { %9 = vsyncpa [#allocation6], 0 }
   0x2   :  { %10 = vsyncpa [#allocation4], 0  ;;  %s235_s12 = smov [#allocation2]   ;;  %s236_s14 = smov [#allocation5]  }
   0x3   :  { %s17_s13 = sshll.u32 %s235_s12, 4  ;;  %s26_s15 = sshll.u32 %s236_s14, 4  ;;  %s18_s13 = int_to_ptr.vmem [resolvable:$true] %s17_s13  ;;  %s27_s15 = int_to_ptr.vmem [resolvable:$true] %s26_s15 }
   0x4   :  { %s177_s16 = scalar_lea.vmem %s18_s13, 128  ;;  %p182_p1 = scmp.lt.s32.totalorder %s18_s13, %s18_s13 }
   0x5   :  { %p178_p0 = scmp.ne.s32.totalorder %s18_s13, %s177_s16  ;;  %p183_p2 = scmp.lt.s32.totalorder %s177_s16, %s177_s16 }
   0x7   :  { %p184_p3 = por %p183_p2, %p182_p1 }
   0x9   :  { %p185_p4 = pnand %p184_p3, %p178_p0 }
   0xb   :  { %188 = shalt.err (!%p185_p4)
}
   0xc   :  { %20 = dma.hbm_to_vmem [thread:$0]  %s274_s0, 128, %s18_s13, [#allocation3]  }
   0xd   :  { %s197_s19 = scalar_lea.vmem %s27_s15, 512  ;;  %p202_p6 = scmp.lt.s32.totalorder %s27_s15, %s27_s15 }
   0xe   :  { %p198_p5 = scmp.ne.s32.totalorder %s27_s15, %s197_s19  ;;  %p203_p7 = scmp.lt.s32.totalorder %s197_s19, %s197_s19 }
  0x10   :  { %p204_p8 = por %p203_p7, %p202_p6 }
  0x12   :  { %p205_p9 = pnand %p204_p8, %p198_p5 }
  0x14   :  { %208 = shalt.err (!%p205_p9)
}
  0x15   :  { %s237_s20 = smov 128   ;;  %s238_s21 = smov 8  }
  0x16   :  { %32 = dma.hbm_to_vmem [thread:$0]  %s275_s1, 512, %s27_s15, [#allocation6], %s237_s20, %s237_s20, %s238_s21  }
  0x17   :  { %229 = dma.done.wait [#allocation3], 128  }
  0x18   :  { %230 = vsyncadd [#allocation3], 4294967168 }
  0x19   :  { %231 = dma.done.wait [#allocation6], 512  }
  0x1a   :  { %232 = vsyncadd [#allocation6], 4294966784  ;;  %v239_v0 = vmov 0.0   ;;  %vm240_vm0 = vmmov 0   ;;  %v45_v1 = vld [vmem:[#allocation5 + $0x18] sm:$0xff]  ;;  %v44_v2 = vld [vmem:[#allocation5 + $0x10] sm:$0xff] }
  0x1b   :  { %151 = vmatprep.subr.mxu0 %v239_v0  ;;  %159 = vmatprep.mubr.msk.f32.mxu0 %vm240_vm0, %v239_v0  ;;  %v43_v3 = vld [vmem:[#allocation5 + $0x8] sm:$0xff]  ;;  %v42_v4 = vld [vmem:[#allocation5] sm:$0xff]  ;;  %v41_v5 = vld [vmem:[#allocation2] sm:$0xff]  ;;  %vm53_vm1 = vcmask 261120   ;;  %s241_s24 = smov [#allocation7]  }
  0x1c   :  { %152 = vmatpush3.msra.mxu0 %v45_v1  ;;  %v144_v6 = vld [vmem:[%s276_s2] ss:$0 sm:$0xff]  ;;  %s134_s25 = sshll.u32 %s241_s24, 4  ;;  %s135_s25 = int_to_ptr.vmem [resolvable:$true] %s134_s25 }
  0x1d   :  { %153 = vmatprep.subr.mxu0 %v239_v0  ;;  %s209_s26 = scalar_lea.vmem %s135_s25, 128  ;;  %p214_p11 = scmp.lt.s32.totalorder %s135_s25, %s135_s25 }
  0x1e   :  { %154 = vmatpush3.msra.mxu0 %v44_v2  ;;  %p210_p10 = scmp.ne.s32.totalorder %s135_s25, %s209_s26  ;;  %p215_p12 = scmp.lt.s32.totalorder %s209_s26, %s209_s26 }
  0x1f   :  { %155 = vmatprep.subr.mxu0 %v239_v0 }
  0x20   :  { %156 = vmatpush3.msra.mxu0 %v43_v3  ;;  %p216_p13 = por %p215_p12, %p214_p11 }
  0x21   :  { %157 = vmatprep.subr.mxu0 %v239_v0 }
  0x22   :  { %158 = vmatpush3.msra.mxu0 %v42_v4  ;;  %p217_p0 = pnand %p216_p13, %p210_p10 }
  0x23   :  { %160 = vmatmul.mubr.msk.f32.vlgmr.msra.gmra.mxu0 %vm53_vm1, %v41_v5 }
  0xe3   :  { %v123_v7 = vpop.f32.mrf.mxu0 }
  0xe4   :  { %v124_v8 = vadd.f32 %v144_v6, %v123_v7 }
  0xe5   :  { %v161_v9 = vpop.f32.mrf.mxu0 }
  0xe6   :  { %127 = vst [vmem:[#allocation7] sm:$0xff] %v124_v8 }
  0xe7   :  { %220 = shalt.err (!%p217_p0)
}
  0xe8   :  { %137 = dma.vmem_to_hbm [thread:$0]  %s135_s25, 128, %s277_s3, [#allocation4]  }
  0xe9   :  { %233 = dma.done.wait [#allocation4], 128  }
  0xea   :  { %234 = vsyncadd [#allocation4], 4294967168 }
  0xeb   :  { %141 = vsyncpa [#allocation3], 1 }
  0xec   :  { %142 = vsyncpa [#allocation6], 1 }
  0xed   :  { %143 = vsyncpa [#allocation4], 1 }

</bundles_post_ra>
